<compile_context>
chip_gen: v7x
topology: tpu7x:2x2x1
jax: 0.10.0
libtpu: 0.0.40
codegen_flags: <defaults>
</compile_context>

<pallas_src>
import math

import jax
import jax.numpy as jnp
from jax.experimental import pallas as pl
from jax.experimental.pallas import tpu as pltpu


# --------------------------------------------------------------------------- #
# Kernels
# --------------------------------------------------------------------------- #
def _copy_kernel(x_ref, o_ref):
    # Pure tile copy; the axis swap lives entirely in the BlockSpec index maps.
    o_ref[...] = x_ref[...]


def _transpose2d_kernel(x_ref, o_ref):
    # (n_blk, c_blk) -> (c_blk, n_blk): lane-dense 2-D tile transpose (XLU).
    o_ref[...] = x_ref[...].T


def _make_swap01_kernel(n_blk):
    # x_ref: (n_blk, c_blk, L)   o_ref: (c_blk, n_blk, L)
    # Small unrolled per-n slice copy performs the leading-axis swap inside VMEM so the
    # output HBM DMA writes contiguous runs of n_blk*L elements instead of only L.
    def kernel(x_ref, o_ref):
        for i in range(n_blk):
            o_ref[:, i, :] = x_ref[i]
    return kernel


# --------------------------------------------------------------------------- #
# Tiling helpers
# --------------------------------------------------------------------------- #
_MIN_RUN_BYTES = 2048      # target contiguous HBM run length on the strided (output) side
_MAX_N_UNROLL = 32         # cap on the unrolled per-n copy count in Path C


def _sublane_align(itemsize):
    # 8 rows for f32, 16 for bf16, 32 for int8 (sub-32-bit dtypes pack along sublanes).
    return max(8, 32 // max(1, itemsize))


def _target_block_bytes():
    """Per-block slab size.  Bigger slabs amortize the ~0.35us per-grid-step overhead;
    bounded so the double-buffered footprint (2 arrays x 2 buffers) stays well under
    every generation's scoped-VMEM default."""
    try:
        kind = jax.devices()[0].device_kind.lower()
    except Exception:
        kind = ""
    if ("v6" in kind) or ("v7" in kind):
        # v6e/v7x: 4 MiB x 4 buffers = 16 MiB < 32 MiB scoped default.
        return 4 * 1024 * 1024
    # v5e (16 MiB scoped default) and unknown chips: stay conservative at 2 MiB blocks.
    return 2 * 1024 * 1024


def _pick_block(dim, bytes_per_unit, align, target_bytes):
    """Largest `align`-multiple block (in units along `dim`) whose slab fits in
    target_bytes, preferring an exact divisor of `dim` (no masked ragged tail block)
    even at a slightly smaller slab."""
    max_units = max(1, target_bytes // max(1, bytes_per_unit))
    if dim <= max_units:
        return dim
    best = max(align, (max_units // align) * align)
    d = (max_units // align) * align
    while d >= align:
        if dim % d == 0:
            return d
        d -= align
    return best   # no aligned divisor exists: accept a masked tail block


def _pick_n_block(N, L, itemsize):
    """Rows of the leading (to-be-swapped) axis per block so the output-side contiguous
    HBM run is >= ~2 KiB, rounded to a sublane-legal value (multiple of 8 or full N)."""
    want = pl.cdiv(_MIN_RUN_BYTES, max(1, L * itemsize))
    want = min(want, _MAX_N_UNROLL)
    if want >= N:
        return N
    n_blk = max(8, ((want + 7) // 8) * 8)
    if n_blk >= N:
        return N
    d = n_blk
    while d >= 8:                      # prefer a divisor of N: no ragged tail block
        if N % d == 0:
            return d
        d -= 8
    return n_blk


# --------------------------------------------------------------------------- #
# Wrapper
# --------------------------------------------------------------------------- #
def transpose_pallas(x, dims=(0, 1)):
    """Pallas equivalent of torch.transpose(x, *dims) for the module default:
    swapping the two leading axes of an N-D (ndim >= 2) input."""
    d0, d1 = (d % x.ndim for d in dims)
    if d0 == d1:
        return x
    # TODO(synk): general torch.transpose over arbitrary axis pairs is not implemented;
    # this kernel covers the module's default dims=(0, 1) leading-axis swap.
    assert {d0, d1} == {0, 1} and x.ndim >= 2, (
        "This kernel implements the module default dims=(0, 1)."
    )

    N, C = x.shape[0], x.shape[1]
    trailing = x.shape[2:]
    L = int(math.prod(trailing)) if trailing else 1
    itemsize = x.dtype.itemsize
    align = _sublane_align(itemsize)
    target_bytes = _target_block_bytes()

    # Advisory to XLA: this custom call is pure memory traffic (read+write each byte once).
    cost = pl.CostEstimate(
        flops=0, transcendentals=0, bytes_accessed=2 * x.size * itemsize
    )
    cparams = pltpu.CompilerParams(dimension_semantics=("parallel", "parallel"))

    # ---- Path A: 2-D input (or trailing dims collapse to 1) ----------------------------
    if L == 1:
        x2 = x.reshape(N, C)
        tile = 512  # 512x512 f32 = 1 MiB/block; x2 arrays x2 buffers = 4 MiB (safe everywhere)
        n_blk = N if N <= tile else tile
        c_blk = C if C <= tile else tile
        gN, gC = pl.cdiv(N, n_blk), pl.cdiv(C, c_blk)
        if gC >= gN:
            grid = (gC, gN)
            in_spec = pl.BlockSpec((n_blk, c_blk), lambda jc, jn: (jn, jc))
            out_spec = pl.BlockSpec((c_blk, n_blk), lambda jc, jn: (jc, jn))
        else:
            grid = (gN, gC)
            in_spec = pl.BlockSpec((n_blk, c_blk), lambda jn, jc: (jn, jc))
            out_spec = pl.BlockSpec((c_blk, n_blk), lambda jn, jc: (jc, jn))
        out2 = pl.pallas_call(
            _transpose2d_kernel,
            out_shape=jax.ShapeDtypeStruct((C, N), x.dtype),
            grid=grid,
            in_specs=[in_spec],
            out_specs=out_spec,
            compiler_params=cparams,
            cost_estimate=cost,
        )(x2)
        return out2.reshape((C, N) + trailing)

    x3 = x.reshape(N, C, L)            # contiguous: only axes 0/1 are swapped

    if L * itemsize >= _MIN_RUN_BYTES:
        # ---- Path B: long trailing rows -> pure-copy kernel, swap via index maps -------
        c_blk = _pick_block(C, L * itemsize, align, target_bytes)
        grid_c = pl.cdiv(C, c_blk)
        in_block = (pl.Squeezed(), c_blk, L)    # one n, c_blk channels, full row
        out_block = (c_blk, pl.Squeezed(), L)
        if grid_c >= N:
            grid = (grid_c, N)
            in_spec = pl.BlockSpec(in_block, lambda jc, n: (n, jc, 0))
            out_spec = pl.BlockSpec(out_block, lambda jc, n: (jc, n, 0))
        else:
            grid = (N, grid_c)
            in_spec = pl.BlockSpec(in_block, lambda n, jc: (n, jc, 0))
            out_spec = pl.BlockSpec(out_block, lambda n, jc: (jc, n, 0))
        kernel = _copy_kernel
    else:
        # ---- Path C: short trailing rows -> block N too, swap axes in-kernel -----------
        n_blk = _pick_n_block(N, L, itemsize)
        c_blk = _pick_block(C, n_blk * L * itemsize, align, target_bytes)
        grid_n, grid_c = pl.cdiv(N, n_blk), pl.cdiv(C, c_blk)
        in_block = (n_blk, c_blk, L)
        out_block = (c_blk, n_blk, L)
        if grid_c >= grid_n:
            grid = (grid_c, grid_n)
            in_spec = pl.BlockSpec(in_block, lambda jc, jn: (jn, jc, 0))
            out_spec = pl.BlockSpec(out_block, lambda jc, jn: (jc, jn, 0))
        else:
            grid = (grid_n, grid_c)
            in_spec = pl.BlockSpec(in_block, lambda jn, jc: (jn, jc, 0))
            out_spec = pl.BlockSpec(out_block, lambda jn, jc: (jc, jn, 0))
        kernel = _make_swap01_kernel(n_blk)

    out3 = pl.pallas_call(
        kernel,
        out_shape=jax.ShapeDtypeStruct((C, N, L), x.dtype),
        grid=grid,
        in_specs=[in_spec],
        out_specs=out_spec,
        compiler_params=cparams,
        cost_estimate=cost,
    )(x3)
    return out3.reshape((C, N) + trailing)


if __name__ == "__main__":
    key = jax.random.PRNGKey(0)
    k1, k2, k3, k4 = jax.random.split(key, 4)

    tests = [
        # Module-default NCHW-style input (short rows -> Path C, blocked-N + in-kernel swap).
        jax.random.normal(k1, (2, 4, 16, 16), dtype=jnp.float32),
        # Long trailing rows (>= 2 KiB) -> Path B, squeezed pure-copy path.
        jax.random.normal(k2, (2, 4, 32, 32), dtype=jnp.float32),
        # Plain 2-D matrix -> Path A, lane-dense in-kernel tile transpose.
        jax.random.normal(k3, (128, 256), dtype=jnp.float32),
        # Odd, non-aligned leading dims (full-array blocks, Path C).
        jax.random.normal(k4, (3, 5, 8, 8), dtype=jnp.float32),
    ]

    for x in tests:
        y = transpose_pallas(x, dims=(0, 1))
        jax.block_until_ready(y)
        ref = jnp.swapaxes(x, 0, 1)
        assert y.shape == ref.shape and y.dtype == ref.dtype, (x.shape, y.shape)
        assert jnp.array_equal(y, ref), x.shape

    print("KERNEL_OK")
</pallas_src>

<mosaic_0001>
module attributes {stable_mosaic.version = 11 : i64} {
  func.func @kernel(%arg0: i32, %arg1: i32, %arg2: memref<2x4x256xf32, #tpu.memory_space<vmem>>, %arg3: memref<4x2x256xf32, #tpu.memory_space<vmem>>) attributes {dimension_semantics = [#tpu.dimension_semantics<parallel>, #tpu.dimension_semantics<parallel>], iteration_bounds = array<i64: 1, 1>, scalar_prefetch = 0 : i64, scratch_operands = 0 : i64, tpu.core_type = #tpu.core_type<tc>, window_params = [{transform_indices = @transform_0, window_bounds = array<i64: 2, 4, 256>}, {transform_indices = @transform_1, window_bounds = array<i64: 4, 2, 256>}]} {
    %c0 = arith.constant 0 : index
    %c0_0 = arith.constant 0 : index
    %c0_1 = arith.constant 0 : index
    %0 = vector.load %arg2[%c0, %c0_0, %c0_1] : memref<2x4x256xf32, #tpu.memory_space<vmem>>, vector<1x4x256xf32>
    %1 = vector.shape_cast %0 : vector<1x4x256xf32> to vector<4x256xf32>
    %c0_2 = arith.constant 0 : index
    %c0_3 = arith.constant 0 : index
    %c0_4 = arith.constant 0 : index
    %2 = vector.load %arg3[%c0_2, %c0_3, %c0_4] : memref<4x2x256xf32, #tpu.memory_space<vmem>>, vector<4x1x256xf32>
    %3 = vector.shape_cast %2 : vector<4x1x256xf32> to vector<4x256xf32>
    %4 = vector.shape_cast %1 : vector<4x256xf32> to vector<4x1x256xf32>
    tpu.vector_store %arg3[%c0_2, %c0_3, %c0_4], %4 {strides = array<i32>} : memref<4x2x256xf32, #tpu.memory_space<vmem>>, vector<4x1x256xf32>,
    %c1 = arith.constant 1 : index
    %c0_5 = arith.constant 0 : index
    %c0_6 = arith.constant 0 : index
    %5 = vector.load %arg2[%c1, %c0_5, %c0_6] : memref<2x4x256xf32, #tpu.memory_space<vmem>>, vector<1x4x256xf32>
    %6 = vector.shape_cast %5 : vector<1x4x256xf32> to vector<4x256xf32>
    %c0_7 = arith.constant 0 : index
    %c1_8 = arith.constant 1 : index
    %c0_9 = arith.constant 0 : index
    %7 = vector.load %arg3[%c0_7, %c1_8, %c0_9] : memref<4x2x256xf32, #tpu.memory_space<vmem>>, vector<4x1x256xf32>
    %8 = vector.shape_cast %7 : vector<4x1x256xf32> to vector<4x256xf32>
    %9 = vector.shape_cast %6 : vector<4x256xf32> to vector<4x1x256xf32>
    tpu.vector_store %arg3[%c0_7, %c1_8, %c0_9], %9 {strides = array<i32>} : memref<4x2x256xf32, #tpu.memory_space<vmem>>, vector<4x1x256xf32>,
    return
  }
  func.func @transform_0(%arg0: i32, %arg1: i32) -> (i32, i32, i32) {
    %c0_i32 = arith.constant 0 : i32
    %c0_i32_0 = arith.constant 0 : i32
    return %arg1, %arg0, %c0_i32 : i32, i32, i32
  }
  func.func @transform_1(%arg0: i32, %arg1: i32) -> (i32, i32, i32) {
    %c0_i32 = arith.constant 0 : i32
    %c0_i32_0 = arith.constant 0 : i32
    return %arg0, %arg1, %c0_i32 : i32, i32, i32
  }
}

</mosaic_0001>

<bundles_post_ra>
// kernel: tpu_custom_call.1
= control target key start
LH: loop header
LB: loop body
LE: loop exit
PB: predicated region body
PF: predicated region fallthrough
CT: control target
= control target key end

     0   :  { %6 = vsyncpa [#allocation3], 0  ;;  %s238_s0 = inlined_call_operand.hbm [shape: f32[2,4,256], index: 0, kind: input, shape index: {}]   ;;  %s239_s1 = inlined_call_operand.hbm [shape: f32[4,2,256], index: 1, kind: output, shape index: {}]  }
   0x1   :  { %7 = vsyncpa [#allocation4], 0  ;;  %s177_s6 = smov [#allocation2]   ;;  %s129_s10 = scalar_lea.hbm %s238_s0, 256 }
   0x2   :  { %s13_s7 = sshll.u32 %s177_s6, 4  ;;  %p130_p0 = scmp.ne.s32.totalorder %s238_s0, %s129_s10  ;;  %s14_s7 = int_to_ptr.vmem [resolvable:$true] %s13_s7 }
   0x3   :  { %p133_p1 = scmp.lt.u32.totalorder %s129_s10, %s238_s0 }
   0x5   :  { %p135_p2 = pnand %p133_p1, %p130_p0 }
   0x7   :  { %138 = shalt.err (!%p135_p2)
}
   0x8   :  { %s139_s15 = scalar_lea.vmem %s14_s7, 256  ;;  %p144_p4 = scmp.lt.s32.totalorder %s14_s7, %s14_s7 }
   0x9   :  { %p140_p3 = scmp.ne.s32.totalorder %s14_s7, %s139_s15  ;;  %p145_p5 = scmp.lt.s32.totalorder %s139_s15, %s139_s15 }
   0xb   :  { %p146_p6 = por %p145_p5, %p144_p4 }
   0xd   :  { %p147_p7 = pnand %p146_p6, %p140_p3 }
   0xf   :  { %150 = shalt.err (!%p147_p7)
}
  0x10   :  { %s178_s16 = smov 128   ;;  %s179_s17 = smov 8  }
  0x11   :  { %19 = dma.hbm_to_vmem [thread:$0]  %s238_s0, 256, %s14_s7, [#allocation3], %s178_s16, %s178_s16, %s179_s17  }
  0x12   :  { %173 = dma.done.wait [#allocation3], 256  }
  0x13   :  { %174 = vsyncadd [#allocation3], 4294967040  ;;  %v36_v0 = vlaneseq  ;;  %v180_v1 = vmov 1966171168   ;;  %s181_s20 = smov [#allocation5]  }
  0x14   :  { %v34_v2 = vunpack.c.l.s4 %v180_v1  ;;  %v120_v7 = vld.sshfl [vmem:[#allocation2] sm:$0xff pattern:$0x75316420]  ;;  %v121_v8 = vld.sshfl [vmem:[#allocation2 + $0x8] sm:$0xff pattern:$0x75316420] }
  0x15   :  { %v37_v3 = vshrl.u32 %v36_v0, 7  ;;  %vm206_vm0 = vcmp.lt.s32.totalorder %v36_v0, 256  ;;  %v32_v10 = vcombine.high %v120_v7, %v120_v7  ;;  %v74_v12 = vcombine.high %v121_v8, %v121_v8  ;;  %s108_s0 = sshll.u32 %s181_s20, 4  ;;  %s109_s0 = int_to_ptr.vmem [resolvable:$true] %s108_s0 }
  0x16   :  { %v35_v4 = vunpack.c.0.s8 %v34_v2  ;;  %s151_s21 = scalar_lea.vmem %s109_s0, 256  ;;  %p156_p9 = scmp.lt.s32.totalorder %s109_s0, %s109_s0 }
  0x17   :  { %p152_p8 = scmp.ne.s32.totalorder %s109_s0, %s151_s21  ;;  %p157_p10 = scmp.lt.s32.totalorder %s151_s21, %s151_s21 }
  0x18   :  { %v38_v5 = vsub.s32 %v35_v4, %v37_v3 }
  0x19   :  { %p158_p11 = por %p157_p10, %p156_p9 }
  0x1a   :  { %v39_v9 = vrot.slane %v120_v7, %v38_v5  ;;  %v81_v11 = vrot.slane %v121_v8, %v38_v5  ;;  %v46_v13 = vrot.slane %v32_v10, %v38_v5  ;;  %v88_v15 = vrot.slane %v74_v12, %v38_v5 }
  0x1b   :  { %p159_p12 = pnand %p158_p11, %p152_p8 }
  0x1c   :  { %57 = vst.msk [vmem:[#allocation5] ss:$2 sm:$0x3] %vm206_vm0, %v39_v9  ;;  %v47_v14 = vcombine.high %v39_v9, %v39_v9  ;;  %96 = vst.msk [vmem:[#allocation5 + $0x1] ss:$2 sm:$0x3] %vm206_vm0, %v81_v11  ;;  %v89_v16 = vcombine.high %v81_v11, %v81_v11  ;;  %v48_v17 = vcombine.high %v46_v13, %v46_v13 }
  0x1d   :  { %59 = vst.msk [vmem:[#allocation5 + $0x4] ss:$2 sm:$0x3] %vm206_vm0, %v46_v13  ;;  %98 = vst.msk [vmem:[#allocation5 + $0x5] ss:$2 sm:$0x3] %vm206_vm0, %v88_v15  ;;  %v90_v18 = vcombine.high %v88_v15, %v88_v15 }
  0x1e   :  { %61 = vst.msk [vmem:[#allocation5 + $0x8] ss:$2 sm:$0x3] %vm206_vm0, %v47_v14  ;;  %100 = vst.msk [vmem:[#allocation5 + $0x9] ss:$2 sm:$0x3] %vm206_vm0, %v89_v16 }
  0x1f   :  { %63 = vst.msk [vmem:[#allocation5 + $0xc] ss:$2 sm:$0x3] %vm206_vm0, %v48_v17  ;;  %102 = vst.msk [vmem:[#allocation5 + $0xd] ss:$2 sm:$0x3] %vm206_vm0, %v90_v18 }
  0x20   :  { %162 = shalt.err (!%p159_p12)
}
  0x21   :  { %s163_s24 = scalar_lea.hbm %s239_s1, 256 }
  0x22   :  { %p164_p13 = scmp.ne.s32.totalorder %s239_s1, %s163_s24  ;;  %p167_p0 = scmp.lt.u32.totalorder %s163_s24, %s239_s1 }
  0x24   :  { %p169_p1 = pnand %p167_p0, %p164_p13 }
  0x26   :  { %172 = shalt.err (!%p169_p1)
}
  0x27   :  { %s182_s29 = smov 64   ;;  %s183_s30 = smov 4  }
  0x28   :  { %114 = dma.vmem_to_hbm [thread:$0]  %s109_s0, 256, %s239_s1, [#allocation4], %s182_s29, %s182_s29, %s183_s30  }
  0x29   :  { %175 = dma.done.wait [#allocation4], 256  }
  0x2a   :  { %176 = vsyncadd [#allocation4], 4294967040 }
  0x2b   :  { %118 = vsyncpa [#allocation3], 1 }
  0x2c   :  { %119 = vsyncpa [#allocation4], 1 }

</bundles_post_ra>
